<compile_context>
chip_gen: v7x
topology: tpu7x:2x2x1
jax: 0.10.0
libtpu: 0.0.40
codegen_flags: <defaults>
</compile_context>

<pallas_src>
import functools

import jax
import jax.numpy as jnp
from jax.experimental import pallas as pl
from jax.experimental.pallas import tpu as pltpu


def _bernoulli_frame_mask_kernel(pmask_ref, u_ref, out_ref, *,
                                 pmask_slope, sparsity):
    # ---- capture-invariant math: computed exactly once -------------------
    p = pmask_ref[...].astype(jnp.float32)                      # (H, W)
    m = jax.nn.sigmoid(jnp.float32(pmask_slope) * p)            # squash_mask

    # sparsify: global-mean renormalization (single XLU reduce)
    xbar = jnp.mean(m)
    r = jnp.float32(sparsity) / xbar
    beta = (1.0 - jnp.float32(sparsity)) / (1.0 - xbar)
    mask = jnp.where(r <= 1.0, m * r, 1.0 - (1.0 - m) * beta)

    # clamp away exact 0/1 so the logs below can never produce inf - inf = NaN
    tiny = jnp.float32(1e-7)
    mask = jnp.clip(mask, tiny, 1.0 - tiny)

    # base logit log(1-mask) - log(mask), shared by every capture
    base_logit = jnp.log(1.0 - mask) - jnp.log(mask)            # (H, W)

    # ---- per-capture sampling (vectorized over the capture axis) ---------
    # g1 - g2 with g_i ~ Gumbel(0,1) is distributed Logistic(0,1) = log(u)-log(1-u),
    # so one uniform per element suffices (same distribution, half the EUP work).
    geps = jnp.float32(1e-20)
    u = u_ref[...].astype(jnp.float32)                          # (C, H, W)
    noise = jnp.log(u + geps) - jnp.log(1.0 - u + geps)

    z = base_logit[None, :, :] + noise                          # (C, H, W)
    # Forward value of the straight-through estimator:
    #   round(1 - sigmoid(z / temp)) == (z < 0)   for any temp > 0,
    # so skip the sigmoid, the divide-by-temp and the round entirely.
    out_ref[...] = (z < 0.0).astype(out_ref.dtype)


def bernoulli_frame_mask(pmask, key, *, num_captures, pmask_slope, sparsity,
                         temp):
    """Returns a hard binary mask of shape (num_captures, 1, H, W), float32."""
    # temp only scales the logit; it does not change the sign, hence not the
    # forward hard sample. Kept in the signature for interface fidelity.
    del temp
    H, W = pmask.shape

    # Uniform noise for the logistic draw (one uniform per output element).
    # Generated outside the kernel: the in-kernel stateful PRNG primitives are
    # TPU-codegen-only and add no value for a problem this small.
    u = jax.random.uniform(key, (num_captures, H, W), dtype=jnp.float32)

    kernel = functools.partial(
        _bernoulli_frame_mask_kernel,
        pmask_slope=float(pmask_slope),
        sparsity=float(sparsity),
    )

    out = pl.pallas_call(
        kernel,
        out_shape=jax.ShapeDtypeStruct((num_captures, H, W), jnp.float32),
        # Single invocation, whole arrays resident in VMEM (tiny problem:
        # everything fits with huge headroom on v5e/v6e/v7x).
        in_specs=[pl.BlockSpec(memory_space=pltpu.MemorySpace.VMEM),
                  pl.BlockSpec(memory_space=pltpu.MemorySpace.VMEM)],
        out_specs=pl.BlockSpec(memory_space=pltpu.MemorySpace.VMEM),
    )(pmask, u)

    # NCHW with C=1, matching mask.unsqueeze(0).unsqueeze(0).repeat(C,1,1,1).
    return out[:, None, :, :]


if __name__ == "__main__":
    # Module hyper-parameters (small, consistent with the module's __init__)
    H, W = 16, 128            # image_dims (W kept a multiple of 128: lane-dense)
    num_captures = 4
    sparsity = 0.25
    pmask_slope = 5.0
    eps = 0.01
    temp = 0.8

    # Deterministic parameter init mirroring the 'learned' branch of __init__:
    #   pmask ~ U(eps, 1-eps);  pmask = -log(1/pmask - 1) / pmask_slope
    key = jax.random.PRNGKey(0)
    k_init, k_noise = jax.random.split(key)
    p0 = jax.random.uniform(k_init, (H, W), minval=eps, maxval=1.0 - eps,
                            dtype=jnp.float32)
    pmask = -jnp.log(1.0 / p0 - 1.0) / pmask_slope

    out = bernoulli_frame_mask(
        pmask, k_noise,
        num_captures=num_captures, pmask_slope=pmask_slope,
        sparsity=sparsity, temp=temp)
    out = jax.block_until_ready(out)

    assert out.shape == (num_captures, 1, H, W), out.shape
    assert out.dtype == jnp.float32
    # Forward of the straight-through estimator is a hard binary mask.
    assert bool(jnp.all((out == 0.0) | (out == 1.0)))
    # Different captures should (almost surely) get different random samples.
    assert bool(jnp.any(out[0] != out[1])) or num_captures == 1

    print("KERNEL_OK")
</pallas_src>

<mosaic_0001>
module attributes {stable_mosaic.version = 11 : i64} {
  func.func @_bernoulli_frame_mask_kernel(%arg0: memref<16x128xf32, #tpu.memory_space<vmem>>, %arg1: memref<4x16x128xf32, #tpu.memory_space<vmem>>, %arg2: memref<4x16x128xf32, #tpu.memory_space<vmem>>) attributes {dimension_semantics = [], scalar_prefetch = 0 : i64, scratch_operands = 0 : i64, tpu.core_type = #tpu.core_type<tc>} {
    %c0 = arith.constant 0 : index
    %c0_0 = arith.constant 0 : index
    %0 = vector.load %arg0[%c0, %c0_0] : memref<16x128xf32, #tpu.memory_space<vmem>>, vector<16x128xf32>
    %cst = arith.constant 5.000000e+00 : f32
    %1 = vector.broadcast %cst : f32 to vector<16x128xf32>
    %2 = arith.mulf %1, %0 : vector<16x128xf32>
    %3 = arith.negf %2 : vector<16x128xf32>
    %4 = math.exp %3 : vector<16x128xf32>
    %cst_1 = arith.constant 1.000000e+00 : f32
    %5 = vector.broadcast %cst_1 : f32 to vector<16x128xf32>
    %6 = arith.addf %5, %4 : vector<16x128xf32>
    %7 = arith.divf %5, %6 : vector<16x128xf32>
    %8 = vector.shape_cast %7 : vector<16x128xf32> to vector<1x16x128xf32>
    %cst_2 = arith.constant dense<0.000000e+00> : vector<1xf32>
    %9 = vector.multi_reduction <add>, %8, %cst_2 [1, 2] : vector<1x16x128xf32> to vector<1xf32>
    %10 = vector.shape_cast %9 : vector<1xf32> to vector<1x1x1xf32>
    %11 = vector.extract %10[0, 0, 0] : f32 from vector<1x1x1xf32>
    %cst_3 = arith.constant 2.048000e+03 : f32
    %12 = arith.divf %11, %cst_3 : f32
    %cst_4 = arith.constant 2.500000e-01 : f32
    %13 = arith.divf %cst_4, %12 : f32
    %cst_5 = arith.constant 1.000000e+00 : f32
    %cst_6 = arith.constant 2.500000e-01 : f32
    %14 = arith.subf %cst_5, %cst_6 : f32
    %cst_7 = arith.constant 1.000000e+00 : f32
    %15 = arith.subf %cst_7, %12 : f32
    %16 = arith.divf %14, %15 : f32
    %cst_8 = arith.constant 1.000000e+00 : f32
    %17 = arith.cmpf ole, %13, %cst_8 : f32
    %18 = vector.broadcast %13 : f32 to vector<16x128xf32>
    %19 = arith.mulf %7, %18 : vector<16x128xf32>
    %cst_9 = arith.constant 1.000000e+00 : f32
    %20 = vector.broadcast %cst_9 : f32 to vector<16x128xf32>
    %21 = arith.subf %20, %7 : vector<16x128xf32>
    %22 = vector.broadcast %16 : f32 to vector<16x128xf32>
    %23 = arith.mulf %21, %22 : vector<16x128xf32>
    %cst_10 = arith.constant 1.000000e+00 : f32
    %24 = vector.broadcast %cst_10 : f32 to vector<16x128xf32>
    %25 = arith.subf %24, %23 : vector<16x128xf32>
    %26 = arith.select %17, %19, %25 : vector<16x128xf32>
    %cst_11 = arith.constant 1.000000e+00 : f32
    %cst_12 = arith.constant 1.000000e-07 : f32
    %27 = arith.subf %cst_11, %cst_12 : f32
    %cst_13 = arith.constant 1.000000e-07 : f32
    %28 = vector.broadcast %cst_13 : f32 to vector<16x128xf32>
    %29 = arith.maximumf %28, %26 : vector<16x128xf32>
    %30 = vector.broadcast %27 : f32 to vector<16x128xf32>
    %31 = arith.minimumf %30, %29 : vector<16x128xf32>
    %cst_14 = arith.constant 1.000000e+00 : f32
    %32 = vector.broadcast %cst_14 : f32 to vector<16x128xf32>
    %33 = arith.subf %32, %31 : vector<16x128xf32>
    %34 = math.log %33 : vector<16x128xf32>
    %35 = math.log %31 : vector<16x128xf32>
    %36 = arith.subf %34, %35 : vector<16x128xf32>
    %c0_15 = arith.constant 0 : index
    %c0_16 = arith.constant 0 : index
    %c0_17 = arith.constant 0 : index
    %37 = vector.load %arg1[%c0_15, %c0_16, %c0_17] : memref<4x16x128xf32, #tpu.memory_space<vmem>>, vector<4x16x128xf32>
    %cst_18 = arith.constant 9.99999968E-21 : f32
    %38 = vector.broadcast %cst_18 : f32 to vector<4x16x128xf32>
    %39 = arith.addf %37, %38 : vector<4x16x128xf32>
    %40 = math.log %39 : vector<4x16x128xf32>
    %cst_19 = arith.constant 1.000000e+00 : f32
    %41 = vector.broadcast %cst_19 : f32 to vector<4x16x128xf32>
    %42 = arith.subf %41, %37 : vector<4x16x128xf32>
    %cst_20 = arith.constant 9.99999968E-21 : f32
    %43 = vector.broadcast %cst_20 : f32 to vector<4x16x128xf32>
    %44 = arith.addf %42, %43 : vector<4x16x128xf32>
    %45 = math.log %44 : vector<4x16x128xf32>
    %46 = arith.subf %40, %45 : vector<4x16x128xf32>
    %47 = vector.shape_cast %36 : vector<16x128xf32> to vector<1x16x128xf32>
    %48 = vector.broadcast %47 : vector<1x16x128xf32> to vector<4x16x128xf32>
    %49 = arith.addf %48, %46 : vector<4x16x128xf32>
    %cst_21 = arith.constant 0.000000e+00 : f32
    %50 = vector.broadcast %cst_21 : f32 to vector<4x16x128xf32>
    %51 = arith.cmpf olt, %49, %50 : vector<4x16x128xf32>
    %52 = arith.extui %51 : vector<4x16x128xi1> to vector<4x16x128xi32>
    %53 = arith.sitofp %52 : vector<4x16x128xi32> to vector<4x16x128xf32>
    %c0_22 = arith.constant 0 : index
    %c0_23 = arith.constant 0 : index
    %c0_24 = arith.constant 0 : index
    %54 = vector.load %arg2[%c0_22, %c0_23, %c0_24] : memref<4x16x128xf32, #tpu.memory_space<vmem>>, vector<4x16x128xf32>
    tpu.vector_store %arg2[%c0_22, %c0_23, %c0_24], %53 {strides = array<i32>} : memref<4x16x128xf32, #tpu.memory_space<vmem>>, vector<4x16x128xf32>,
    return
  }
}

</mosaic_0001>

<bundles_post_ra>
// kernel: tpu_custom_call.1
= control target key start
LH: loop header
LB: loop body
LE: loop exit
PB: predicated region body
PF: predicated region fallthrough
CT: control target
= control target key end

     0   :  { %7 = vsyncpa [#allocation3], 0  ;;  %s468_s0 = inlined_call_operand.hbm [shape: f32[16,128], index: 0, kind: input, shape index: {}]   ;;  %s469_s1 = inlined_call_operand.hbm [shape: f32[4,16,128], index: 1, kind: input, shape index: {}]   ;;  %s470_s2 = inlined_call_operand.hbm [shape: f32[4,16,128], index: 2, kind: output, shape index: {}]  }
   0x1   :  { %8 = vsyncpa [#allocation6], 0 }
   0x2   :  { %9 = vsyncpa [#allocation4], 0  ;;  %s386_s9 = smov [#allocation2]   ;;  %s314_s13 = scalar_lea.hbm %s468_s0, 256 }
   0x3   :  { %s15_s10 = sshll.u32 %s386_s9, 4  ;;  %p315_p0 = scmp.ne.s32.totalorder %s468_s0, %s314_s13  ;;  %s16_s10 = int_to_ptr.vmem [resolvable:$true] %s15_s10 }
   0x4   :  { %p318_p1 = scmp.lt.u32.totalorder %s314_s13, %s468_s0 }
   0x6   :  { %p320_p2 = pnand %p318_p1, %p315_p0 }
   0x8   :  { %323 = shalt.err (!%p320_p2)
}
   0x9   :  { %s324_s18 = scalar_lea.vmem %s16_s10, 256  ;;  %p329_p4 = scmp.lt.s32.totalorder %s16_s10, %s16_s10 }
   0xa   :  { %p325_p3 = scmp.ne.s32.totalorder %s16_s10, %s324_s18  ;;  %p330_p5 = scmp.lt.s32.totalorder %s324_s18, %s324_s18 }
   0xc   :  { %p331_p6 = por %p330_p5, %p329_p4 }
   0xe   :  { %p332_p7 = pnand %p331_p6, %p325_p3 }
  0x10   :  { %335 = shalt.err (!%p332_p7)
}
  0x11   :  { %s387_s19 = smov 128   ;;  %s388_s20 = smov 8  }
  0x12   :  { %21 = dma.hbm_to_vmem [thread:$0]  %s468_s0, 256, %s16_s10, [#allocation3], %s387_s19, %s387_s19, %s388_s20  }
  0x13   :  { %s389_s23 = smov [#allocation5]   ;;  %s336_s27 = scalar_lea.hbm %s469_s1, 1024 }
  0x14   :  { %s27_s24 = sshll.u32 %s389_s23, 4  ;;  %p337_p8 = scmp.ne.s32.totalorder %s469_s1, %s336_s27  ;;  %s28_s24 = int_to_ptr.vmem [resolvable:$true] %s27_s24 }
  0x15   :  { %p340_p9 = scmp.lt.u32.totalorder %s336_s27, %s469_s1 }
  0x17   :  { %p342_p10 = pnand %p340_p9, %p337_p8 }
  0x19   :  { %345 = shalt.err (!%p342_p10)
}
  0x1a   :  { %s346_s4 = scalar_lea.vmem %s28_s24, 1024  ;;  %p351_p12 = scmp.lt.s32.totalorder %s28_s24, %s28_s24 }
  0x1b   :  { %p347_p11 = scmp.ne.s32.totalorder %s28_s24, %s346_s4  ;;  %p352_p13 = scmp.lt.s32.totalorder %s346_s4, %s346_s4 }
  0x1d   :  { %p353_p0 = por %p352_p13, %p351_p12 }
  0x1f   :  { %p354_p1 = pnand %p353_p0, %p347_p11 }
  0x21   :  { %357 = shalt.err (!%p354_p1)
}
  0x22   :  { %33 = dma.hbm_to_vmem [thread:$0]  %s469_s1, 1024, %s28_s24, [#allocation6], %s387_s19, %s387_s19, %s388_s20  }
  0x23   :  { %380 = dma.done.wait [#allocation3], 256  }
  0x24   :  { %381 = vsyncadd [#allocation3], 4294967040 }
  0x25   :  { %382 = dma.done.wait [#allocation6], 1024  }
  0x26   :  { %383 = vsyncadd [#allocation6], 4294966272  ;;  %v40_v0 = vld [vmem:[#allocation2] sm:$0xff]  ;;  %v41_v1 = vld [vmem:[#allocation2 + $0x8] sm:$0xff]  ;;  %s390_s14 = smov [#allocation7]  }
  0x27   :  { %v240_v2 = vmul.f32 -5.0, %v40_v0  ;;  %v241_v3 = vmul.f32 -5.0, %v41_v1  ;;  %v110_v24 = vld [vmem:[#allocation5] sm:$0xff]  ;;  %v111_v25 = vld [vmem:[#allocation5 + $0x8] sm:$0xff]  ;;  %v112_v27 = vld [vmem:[#allocation5 + $0x10] sm:$0xff]  ;;  %s227_s15 = sshll.u32 %s390_s14, 4  ;;  %s228_s15 = int_to_ptr.vmem [resolvable:$true] %s227_s15 }
  0x28   :  { %v118_v26 = vadd.f32 1e-20, %v110_v24  ;;  %v119_v28 = vadd.f32 1e-20, %v111_v25  ;;  %v113_v29 = vld [vmem:[#allocation5 + $0x18] sm:$0xff]  ;;  %v114_v31 = vld [vmem:[#allocation5 + $0x20] sm:$0xff]  ;;  %p363_p4 = scmp.lt.s32.totalorder %s228_s15, %s228_s15 }
  0x29   :  { %v46_v4 = vmul.f32 1.442695, %v240_v2  ;;  %v48_v5 = vmul.f32 1.442695, %v241_v3  ;;  %v120_v30 = vadd.f32 1e-20, %v112_v27 }
  0x2a   :  { %v121_v32 = vadd.f32 1e-20, %v113_v29  ;;  %v115_v33 = vld [vmem:[#allocation5 + $0x28] sm:$0xff]  ;;  %v122_v34 = vadd.f32 1e-20, %v114_v31  ;;  %v142_v35 = vsub.f32 1.0, %v110_v24 }
  0x2b   :  { %262 = vpow2.f32 %v46_v4  ;;  %v116_v36 = vld [vmem:[#allocation5 + $0x30] sm:$0xff]  ;;  %v123_v37 = vadd.f32 1e-20, %v115_v33  ;;  %v143_v38 = vsub.f32 1.0, %v111_v25  ;;  %v117_v39 = vld [vmem:[#allocation5 + $0x38] sm:$0xff]  ;;  %v144_v41 = vsub.f32 1.0, %v112_v27 }
  0x2c   :  { %264 = vpow2.f32 %v48_v5  ;;  %v124_v40 = vadd.f32 1e-20, %v116_v36  ;;  %v125_v42 = vadd.f32 1e-20, %v117_v39  ;;  %v145_v43 = vsub.f32 1.0, %v113_v29  ;;  %s358_s16 = scalar_lea.vmem %s228_s15, 1024 }
  0x2d   :  { %v150_v45 = vadd.f32 1e-20, %v142_v35  ;;  %v146_v46 = vsub.f32 1.0, %v114_v31  ;;  %v147_v47 = vsub.f32 1.0, %v115_v33  ;;  %v151_v48 = vadd.f32 1e-20, %v143_v38  ;;  %p359_p3 = scmp.ne.s32.totalorder %s228_s15, %s358_s16  ;;  %p364_p5 = scmp.lt.s32.totalorder %s358_s16, %s358_s16 }
  0x2e   :  { %v148_v50 = vsub.f32 1.0, %v116_v36  ;;  %v152_v51 = vadd.f32 1e-20, %v144_v41  ;;  %v149_v52 = vsub.f32 1.0, %v117_v39  ;;  %v153_v53 = vadd.f32 1e-20, %v145_v43 }
  0x2f   :  { %v154_v56 = vadd.f32 1e-20, %v146_v46  ;;  %v155_v57 = vadd.f32 1e-20, %v147_v47  ;;  %p365_p6 = por %p364_p5, %p363_p4 }
  0x30   :  { %v156_v61 = vadd.f32 1e-20, %v148_v50  ;;  %v157_v1 = vadd.f32 1e-20, %v149_v52 }
  0x31   :  { %p366_p7 = pnand %p365_p6, %p359_p3 }
  0x35   :  { %v263_v6 = vpop.eup %262 }
  0x36   :  { %v265_v7 = vpop.eup %264  ;;  %v50_v8 = vadd.f32 1.0, %v263_v6 }
  0x37   :  { %v51_v9 = vadd.f32 1.0, %v265_v7 }
  0x38   :  { %266 = vrcp.f32 %v50_v8 }
  0x39   :  { %268 = vrcp.f32 %v51_v9 }
  0x42   :  { %v437_v10 = vpop.eup %266 }
  0x43   :  { %v439_v11 = vpop.eup %268  ;;  %v82_v44 = vsub.f32 1.0, %v437_v10 }
  0x44   :  { %v56_v12 = vadd.f32 %v439_v11, %v437_v10  ;;  %v83_v49 = vsub.f32 1.0, %v439_v11 }
  0x46   :  { %57 = vadd.xlane.f32.xlu0 %v56_v12 }
  0xd3   :  { %v58_v13 = vpop.xlane.xlu0 %57 }
  0xd4   :  { %v59_v14 = vrot.slane %v58_v13, 4 }
  0xd6   :  { %v60_v15 = vadd.f32 %v59_v14, %v58_v13 }
  0xd8   :  { %v61_v16 = vrot.slane %v60_v15, 2 }
  0xda   :  { %v62_v17 = vadd.f32 %v61_v16, %v60_v15 }
  0xdc   :  { %v63_v18 = vrot.slane %v62_v17, 1 }
  0xde   :  { %v64_v19 = vadd.f32 %v63_v18, %v62_v17 }
  0xe0   :  { %250 = vpush %v64_v19 }
 0x111   :  { %s251_s1 = spop %250 }
 0x112   :  { %s68_s6 = smul.f32 0.00048828125, %s251_s1 }
 0x114   :  { %v69_v20 = vstv %s68_s6  ;;  %s73_s7 = ssub.f32 1.0, %s68_s6 }
 0x115   :  { %270 = vrcp.f32 %v69_v20 }
 0x116   :  { %v74_v21 = vstv %s73_s7 }
 0x117   :  { %272 = vrcp.f32 %v74_v21 }
 0x118   :  { %274 = vlog2.f32 %v118_v26 }
 0x119   :  { %276 = vlog2.f32 %v119_v28 }
 0x11a   :  { %278 = vlog2.f32 %v120_v30 }
 0x11b   :  { %280 = vlog2.f32 %v121_v32 }
 0x11c   :  { %282 = vlog2.f32 %v122_v34 }
 0x11d   :  { %284 = vlog2.f32 %v123_v37 }
 0x11e   :  { %286 = vlog2.f32 %v124_v40 }
 0x11f   :  { %v271_v22 = vpop.eup %270  ;;  %288 = vlog2.f32 %v125_v42 }
 0x120   :  { %252 = vpush %v271_v22  ;;  %290 = vlog2.f32 %v150_v45 }
 0x121   :  { %v273_v23 = vpop.eup %272  ;;  %292 = vlog2.f32 %v151_v48 }
 0x122   :  { %254 = vpush %v273_v23  ;;  %v275_v58 = vpop.eup %274  ;;  %294 = vlog2.f32 %v152_v51 }
 0x123   :  { %v277_v62 = vpop.eup %276  ;;  %296 = vlog2.f32 %v153_v53  ;;  %v127_v25 = vmul.f32 0.6931472, %v275_v58 }
 0x124   :  { %v279_v2 = vpop.eup %278  ;;  %298 = vlog2.f32 %v154_v56  ;;  %v129_v27 = vmul.f32 0.6931472, %v277_v62 }
 0x125   :  { %v281_v6 = vpop.eup %280  ;;  %300 = vlog2.f32 %v155_v57  ;;  %v131_v28 = vmul.f32 0.6931472, %v279_v2 }
 0x126   :  { %v283_v7 = vpop.eup %282  ;;  %302 = vlog2.f32 %v156_v61  ;;  %v133_v29 = vmul.f32 0.6931472, %v281_v6 }
 0x127   :  { %v285_v12 = vpop.eup %284  ;;  %304 = vlog2.f32 %v157_v1  ;;  %v135_v31 = vmul.f32 0.6931472, %v283_v7 }
 0x128   :  { %v137_v32 = vmul.f32 0.6931472, %v285_v12 }
 0x151   :  { %s253_s8 = spop %252 }
 0x152   :  { %s72_s9 = smul.f32 0.25, %s253_s8 }
 0x153   :  { %s255_s10 = spop %254 }
 0x154   :  { %p445_p2 = scmp.le.f32.partialorder %s72_s9, 1.0  ;;  %s77_s12 = smul.f32 0.75, %s255_s10  ;;  %v79_v54 = vstv %s72_s9 }
 0x155   :  { %v80_v63 = vmul.f32 %v437_v10, %v79_v54  ;;  %v81_v3 = vmul.f32 %v439_v11, %v79_v54  ;;  %v287_v10 = vpop.eup %286 }
 0x156   :  { %s89_s13 = scalar_select %p445_p2, 1, 0  ;;  %v84_v55 = vstv %s77_s12  ;;  %v289_v15 = vpop.eup %288  ;;  %v139_v37 = vmul.f32 0.6931472, %v287_v10 }
 0x157   :  { %v85_v59 = vmul.f32 %v84_v55, %v82_v44  ;;  %v86_v60 = vmul.f32 %v84_v55, %v83_v49  ;;  %v291_v18 = vpop.eup %290  ;;  %v141_v41 = vmul.f32 0.6931472, %v289_v15 }
 0x158   :  { %v90_v0 = vstv %s89_s13  ;;  %v293_v11 = vpop.eup %292  ;;  %v159_v33 = vmul.f32 0.6931472, %v291_v18 }
 0x159   :  { %vm91_vm0 = vcmp.eq.s32.totalorder %v90_v0, 1  ;;  %v87_v4 = vsub.f32 1.0, %v85_v59  ;;  %v88_v5 = vsub.f32 1.0, %v86_v60  ;;  %v295_v21 = vpop.eup %294  ;;  %v161_v34 = vmul.f32 0.6931472, %v293_v11 }
 0x15a   :  { %v297_v22 = vpop.eup %296  ;;  %v163_v35 = vmul.f32 0.6931472, %v295_v21  ;;  %v174_v46 = vsub.f32 %v127_v25, %v159_v33 }
 0x15b   :  { %v92_v8 = vsel %vm91_vm0, %v80_v63, %v87_v4  ;;  %v93_v9 = vsel %vm91_vm0, %v81_v3, %v88_v5  ;;  %v299_v23 = vpop.eup %298  ;;  %v165_v36 = vmul.f32 0.6931472, %v297_v22  ;;  %v175_v47 = vsub.f32 %v129_v27, %v161_v34 }
 0x15c   :  { %v94_v13 = vmax.f32 %v92_v8, 1e-07  ;;  %v95_v14 = vmax.f32 %v93_v9, 1e-07  ;;  %v301_v24 = vpop.eup %300  ;;  %v167_v38 = vmul.f32 0.6931472, %v299_v23  ;;  %v176_v48 = vsub.f32 %v131_v28, %v163_v35 }
 0x15d   :  { %v303_v26 = vpop.eup %302  ;;  %v169_v42 = vmul.f32 0.6931472, %v301_v24  ;;  %v177_v49 = vsub.f32 %v133_v29, %v165_v36  ;;  %v391_v5 = vmov 0.0  }
 0x15e   :  { %v96_v16 = vmin.f32 %v94_v13, 0.9999999  ;;  %v97_v17 = vmin.f32 %v95_v14, 0.9999999  ;;  %v305_v30 = vpop.eup %304  ;;  %v171_v39 = vmul.f32 0.6931472, %v303_v26  ;;  %v178_v53 = vsub.f32 %v135_v31, %v167_v38 }
 0x15f   :  { %v173_v43 = vmul.f32 0.6931472, %v305_v30  ;;  %v179_v57 = vsub.f32 %v137_v32, %v169_v42 }
 0x160   :  { %v98_v19 = vsub.f32 1.0, %v96_v16  ;;  %v99_v20 = vsub.f32 1.0, %v97_v17  ;;  %306 = vlog2.f32 %v96_v16  ;;  %v180_v54 = vsub.f32 %v139_v37, %v171_v39 }
 0x161   :  { %308 = vlog2.f32 %v97_v17  ;;  %v181_v58 = vsub.f32 %v141_v41, %v173_v43 }
 0x162   :  { %310 = vlog2.f32 %v98_v19 }
 0x163   :  { %312 = vlog2.f32 %v99_v20 }
 0x16a   :  { %v307_v40 = vpop.eup %306 }
 0x16b   :  { %v309_v44 = vpop.eup %308  ;;  %v105_v52 = vmul.f32 0.6931472, %v307_v40 }
 0x16c   :  { %v311_v45 = vpop.eup %310  ;;  %v107_v56 = vmul.f32 0.6931472, %v309_v44 }
 0x16d   :  { %v313_v50 = vpop.eup %312  ;;  %v101_v51 = vmul.f32 0.6931472, %v311_v45 }
 0x16e   :  { %v103_v55 = vmul.f32 0.6931472, %v313_v50 }
 0x16f   :  { %v108_v59 = vsub.f32 %v101_v51, %v105_v52 }
 0x170   :  { %v109_v60 = vsub.f32 %v103_v55, %v107_v56 }
 0x171   :  { %v182_v61 = vadd.f32 %v174_v46, %v108_v59  ;;  %v184_v62 = vadd.f32 %v176_v48, %v108_v59  ;;  %v186_v63 = vadd.f32 %v178_v53, %v108_v59  ;;  %v188_v0 = vadd.f32 %v180_v54, %v108_v59 }
 0x172   :  { %v183_v1 = vadd.f32 %v175_v47, %v109_v60  ;;  %v185_v2 = vadd.f32 %v177_v49, %v109_v60  ;;  %v187_v3 = vadd.f32 %v179_v57, %v109_v60  ;;  %v189_v4 = vadd.f32 %v181_v58, %v109_v60 }
 0x173   :  { %vm190_vm1 = vcmp.lt.f32.partialorder %v182_v61, 0.0  ;;  %vm192_vm2 = vcmp.lt.f32.partialorder %v184_v62, 0.0  ;;  %vm194_vm3 = vcmp.lt.f32.partialorder %v186_v63, 0.0  ;;  %vm196_vm4 = vcmp.lt.f32.partialorder %v188_v0, 0.0 }
 0x174   :  { %vm191_vm5 = vcmp.lt.f32.partialorder %v183_v1, 0.0  ;;  %vm193_vm6 = vcmp.lt.f32.partialorder %v185_v2, 0.0  ;;  %vm195_vm7 = vcmp.lt.f32.partialorder %v187_v3, 0.0  ;;  %vm197_vm8 = vcmp.lt.f32.partialorder %v189_v4, 0.0 }
 0x175   :  { %v242_v6 = vsel %vm190_vm1, 1.0, %v391_v5  ;;  %v243_v7 = vsel %vm191_vm5, 1.0, %v391_v5  ;;  %v244_v8 = vsel %vm192_vm2, 1.0, %v391_v5  ;;  %v245_v9 = vsel %vm193_vm6, 1.0, %v391_v5 }
 0x176   :  { %v246_v12 = vsel %vm194_vm3, 1.0, %v391_v5  ;;  %v247_v13 = vsel %vm195_vm7, 1.0, %v391_v5  ;;  %v248_v14 = vsel %vm196_vm4, 1.0, %v391_v5  ;;  %v249_v10 = vsel %vm197_vm8, 1.0, %v391_v5  ;;  %214 = vst [vmem:[#allocation7] sm:$0xff] %v242_v6  ;;  %215 = vst [vmem:[#allocation7 + $0x8] sm:$0xff] %v243_v7 }
 0x177   :  { %216 = vst [vmem:[#allocation7 + $0x10] sm:$0xff] %v244_v8  ;;  %217 = vst [vmem:[#allocation7 + $0x18] sm:$0xff] %v245_v9 }
 0x178   :  { %218 = vst [vmem:[#allocation7 + $0x20] sm:$0xff] %v246_v12  ;;  %219 = vst [vmem:[#allocation7 + $0x28] sm:$0xff] %v247_v13 }
 0x179   :  { %220 = vst [vmem:[#allocation7 + $0x30] sm:$0xff] %v248_v14  ;;  %221 = vst [vmem:[#allocation7 + $0x38] sm:$0xff] %v249_v10 }
 0x17a   :  { %369 = shalt.err (!%p366_p7)
}
 0x17b   :  { %s370_s21 = scalar_lea.hbm %s470_s2, 1024 }
 0x17c   :  { %p371_p8 = scmp.ne.s32.totalorder %s470_s2, %s370_s21  ;;  %p374_p9 = scmp.lt.u32.totalorder %s370_s21, %s470_s2 }
 0x17e   :  { %p376_p10 = pnand %p374_p9, %p371_p8 }
 0x180   :  { %379 = shalt.err (!%p376_p10)
}
 0x181   :  { %233 = dma.vmem_to_hbm [thread:$0]  %s228_s15, 1024, %s470_s2, [#allocation4], %s387_s19, %s387_s19, %s388_s20  }
 0x182   :  { %384 = dma.done.wait [#allocation4], 1024  }
 0x183   :  { %385 = vsyncadd [#allocation4], 4294966272 }
 0x184   :  { %237 = vsyncpa [#allocation3], 1 }
 0x185   :  { %238 = vsyncpa [#allocation6], 1 }
 0x186   :  { %239 = vsyncpa [#allocation4], 1 }

</bundles_post_ra>
